<compile_context>
chip_gen: v7x
topology: tpu7x:2x2x1
jax: 0.10.0
libtpu: 0.0.40
codegen_flags: <defaults>
</compile_context>

<pallas_src>
import functools

import jax
import jax.numpy as jnp
from jax.experimental import pallas as pl
from jax.experimental.pallas import tpu as pltpu


def _round_up(x, m):
    return (x + m - 1) // m * m


def prepare_params(params, *, num_heads=2, window_size=4, causal=True,
                   qk_scale=None, compute_dtype=jnp.float32):
    """One-time parameter prep: block-diagonal weights + hoisted constants."""
    wqkv = jnp.asarray(params["wqkv"], jnp.float32)    # (3C, C)  nn.Linear weight
    wproj = jnp.asarray(params["wproj"], jnp.float32)  # (C, C)
    bproj = jnp.asarray(params["bproj"], jnp.float32)  # (C,)
    C = wproj.shape[0]
    W = window_size
    assert C % num_heads == 0
    hd = C // num_heads
    scale = float(qk_scale) if qk_scale is not None else hd ** (-0.5)
    WC = W * C

    wqkv_t = wqkv.T                                    # (C, 3C)
    wq, wk, wv = wqkv_t[:, :C], wqkv_t[:, C:2 * C], wqkv_t[:, 2 * C:]
    eye_w = jnp.eye(W, dtype=jnp.float32)

    def blockdiag(w):                                  # (C, N) -> (W*C, W*N)
        return jnp.kron(eye_w, w)

    # (WC, 3*WC): q for all positions, then k, then v -> lane-aligned slices.
    wqkv_big = jnp.concatenate(
        [blockdiag(wq), blockdiag(wk), blockdiag(wv)], axis=1)
    wproj_big = blockdiag(wproj.T)                     # (WC, WC)
    bias_big = jnp.tile(bproj.reshape(1, C), (1, W))   # (1, WC), f32

    # Head-block matrix: (q*k) @ hb reduces over the head dim AND broadcasts the
    # score back across that head's lanes, with the 1/sqrt(hd) scale folded in.
    lane = jnp.arange(WC)
    pos = lane // C
    head = (lane % C) // hd
    same = (pos[:, None] == pos[None, :]) & (head[:, None] == head[None, :])
    hb = jnp.where(same, scale, 0.0).astype(jnp.float32)          # (WC, WC)

    # Relative shifts (key position j = i - d) + additive softmax masks.
    shifts = tuple(range(W)) if causal else tuple(range(-(W - 1), W))
    mask_rows = []
    for d in shifts:
        j = pos - d
        valid = (j >= 0) & (j < W)
        mask_rows.append(jnp.where(valid, 0.0, -1e30))  # finite: no inf-inf NaN
    mask = jnp.stack(mask_rows).astype(jnp.float32)               # (S, WC)

    return {
        "wqkv_big": wqkv_big.astype(compute_dtype),
        "wproj_big": wproj_big.astype(compute_dtype),
        "bias_big": bias_big,                           # stays f32
        "hb": hb.astype(compute_dtype),
        "mask": mask,                                   # stays f32
        "shifts": shifts,
        "num_heads": num_heads,
        "window_size": W,
        "dim": C,
        "causal": causal,
        "compute_dtype": compute_dtype,
    }


def _temporal_attention_kernel(x_ref, wqkv_ref, wproj_ref, bias_ref, hb_ref,
                               mask_ref, o_ref, *, window, dim, shifts,
                               compute_dtype):
    """One grid step = NW windows, fully lane-dense.

    x_ref    : (NW, W*C)     window rows packed on lanes (pos-major, chan-minor)
    wqkv_ref : (W*C, 3*W*C)  block-diagonal qkv weight (q | k | v column regions)
    wproj_ref: (W*C, W*C)    block-diagonal proj weight
    bias_ref : (1,  W*C)     proj bias tiled per window position (f32)
    hb_ref   : (W*C, W*C)    per-(position, head) reduce+broadcast, scale folded
    mask_ref : (S,  W*C)     additive softmax mask per shift (0 / -1e30)
    o_ref    : (NW, W*C)
    """
    C = dim
    WC = window * C
    cd = compute_dtype

    x = x_ref[...].astype(cd)                                            # (NW, WC)

    # Fused qkv projection: one lane-dense MXU matmul (K = WC).
    qkv = jnp.dot(x, wqkv_ref[...], preferred_element_type=jnp.float32)  # (NW, 3WC)
    q = qkv[:, :WC]
    k = qkv[:, WC:2 * WC]
    v = qkv[:, 2 * WC:3 * WC]

    hb = hb_ref[...]

    # Scores per relative shift d (key position j = i - d): the lane rotate is
    # an XLU op, the per-head reduction+broadcast(+scale) is one MXU matmul.
    s = []
    for di, d in enumerate(shifts):
        sh = (d * C) % WC
        k_d = pltpu.roll(k, shift=sh, axis=1) if sh else k
        s_d = jnp.dot((q * k_d).astype(cd), hb,
                      preferred_element_type=jnp.float32)                # (NW, WC)
        if d != 0:                                    # d==0 mask row is all-zero
            s_d = s_d + mask_ref[di:di + 1, :]
        s.append(s_d)

    # Numerically stable softmax over shifts; probabilities are streamed.
    m = s[0]
    for s_d in s[1:]:
        m = jnp.maximum(m, s_d)

    l = jnp.zeros_like(m)
    acc = jnp.zeros_like(m)
    for di, d in enumerate(shifts):
        p = jnp.exp(s[di] - m)
        l = l + p
        sh = (d * C) % WC
        v_d = pltpu.roll(v, shift=sh, axis=1) if sh else v
        acc = acc + p * v_d
    attn = acc * pl.reciprocal(l, approx=True)        # softmax norm on the EUP

    # Output projection + bias (bias added in f32); lane-dense store.
    out = jnp.dot(attn.astype(cd), wproj_ref[...],
                  preferred_element_type=jnp.float32)
    out = out + bias_ref[...]
    o_ref[...] = out.astype(o_ref.dtype)


def temporal_attention(x, prepared, *, windows_per_block=1024,
                       vmem_limit_bytes=48 * 1024 * 1024):
    """x: (B, T, C); `prepared` comes from prepare_params().  Returns (B, T, C)."""
    B, T, C = x.shape
    W = prepared["window_size"]
    assert C == prepared["dim"]
    assert (B * T) % W == 0
    # NOTE: like the PyTorch module's x.reshape(-1, W, C), a window may span two
    # batch elements when T % W != 0 (kept for spec fidelity).

    Bw = (B * T) // W
    WC = W * C
    x_pk = x.reshape(Bw, WC)            # windows flattened onto lanes, stored dtype

    # Many windows per step (amortise ~0.35us/step pipeline overhead), but keep
    # the grid >= 2 whenever possible so both v7x TensorCores get work.
    NW = max(8, _round_up(min(windows_per_block, (Bw + 1) // 2), 8))
    Bw_pad = _round_up(Bw, NW)
    if Bw_pad != Bw:
        x_pk = jnp.pad(x_pk, ((0, Bw_pad - Bw), (0, 0)))
    grid = Bw_pad // NW

    n_shift = len(prepared["shifts"])
    kernel = functools.partial(
        _temporal_attention_kernel,
        window=W, dim=C, shifts=prepared["shifts"],
        compute_dtype=prepared["compute_dtype"])

    out_pk = pl.pallas_call(
        kernel,
        out_shape=jax.ShapeDtypeStruct((Bw_pad, WC), x.dtype),
        grid_spec=pltpu.PrefetchScalarGridSpec(
            num_scalar_prefetch=0,
            grid=(grid,),
            in_specs=[
                pl.BlockSpec((NW, WC), lambda b: (b, 0)),
                pl.BlockSpec((WC, 3 * WC), lambda b: (0, 0)),
                pl.BlockSpec((WC, WC), lambda b: (0, 0)),
                pl.BlockSpec((1, WC), lambda b: (0, 0)),
                pl.BlockSpec((WC, WC), lambda b: (0, 0)),
                pl.BlockSpec((n_shift, WC), lambda b: (0, 0)),
            ],
            out_specs=pl.BlockSpec((NW, WC), lambda b: (b, 0)),
        ),
        compiler_params=pltpu.CompilerParams(
            dimension_semantics=("parallel",),
            vmem_limit_bytes=vmem_limit_bytes),
    )(x_pk, prepared["wqkv_big"], prepared["wproj_big"], prepared["bias_big"],
      prepared["hb"], prepared["mask"])

    return out_pk[:Bw].reshape(B, T, C)


def temporal_attention_ref(x, params, *, num_heads=2, window_size=4, causal=True,
                           qk_scale=None):
    """Pure-JAX reference mirroring the PyTorch forward pass."""
    B0, T0, C0 = x.shape
    head_dim = C0 // num_heads
    scale = qk_scale if qk_scale is not None else head_dim ** (-0.5)
    xw = x.reshape(-1, window_size, C0)
    B, T, C = xw.shape
    qkv = xw @ params["wqkv"].T                       # (B, T, 3C), qkv_bias=False
    qkv = qkv.reshape(B, T, 3, num_heads, head_dim).transpose(2, 0, 3, 1, 4)
    q, k, v = qkv[0], qkv[1], qkv[2]                  # (B, H, T, hd)
    attn = jnp.einsum("bhqd,bhkd->bhqk", q, k) * scale
    if causal:
        mask = jnp.tril(jnp.ones((window_size, window_size)))
        attn = jnp.where(mask == 0, -jnp.inf, attn)
    attn = jax.nn.softmax(attn, axis=-1)
    o = jnp.einsum("bhqk,bhkd->bhqd", attn, v)        # (B, H, T, hd)
    o = o.transpose(0, 2, 1, 3).reshape(B, T, C)
    o = o @ params["wproj"].T + params["bproj"]
    return o.reshape(B0, T0, C0)


if __name__ == "__main__":
    # Small shapes consistent with the module: B=2, T=8, dim=32, heads=2, W=4.
    B, T, C = 2, 8, 32
    heads, window_size = 2, 4

    key = jax.random.PRNGKey(0)
    kx, kq, kp, kb = jax.random.split(key, 4)
    x = jax.random.normal(kx, (B, T, C), dtype=jnp.float32)

    params = {
        # nn.Linear(dim, 3*dim, bias=False).weight : (3C, C)
        "wqkv": jax.random.normal(kq, (3 * C, C), dtype=jnp.float32) * 0.05,
        # nn.Linear(dim, dim).weight / bias
        "wproj": jax.random.normal(kp, (C, C), dtype=jnp.float32) * 0.05,
        "bproj": jax.random.normal(kb, (C,), dtype=jnp.float32) * 0.05,
    }

    prepared = prepare_params(params, num_heads=heads, window_size=window_size,
                              causal=True)
    ref = temporal_attention_ref(x, params, num_heads=heads,
                                 window_size=window_size, causal=True)

    # f32 path (tolerance covers the approximate EUP reciprocal in the softmax).
    out = jax.block_until_ready(temporal_attention(x, prepared))
    assert out.shape == (B, T, C) and out.dtype == x.dtype
    assert jnp.allclose(out, ref, atol=5e-3, rtol=5e-3), (
        "f32 mismatch vs reference: max abs err = "
        f"{float(jnp.max(jnp.abs(out - ref)))}")

    # Multi-step grid (exercises window batching + the "parallel" grid axis).
    B2, T2 = 4, 16
    x2 = jax.random.normal(jax.random.PRNGKey(1), (B2, T2, C), dtype=jnp.float32)
    out2 = jax.block_until_ready(temporal_attention(x2, prepared))
    ref2 = temporal_attention_ref(x2, params, num_heads=heads,
                                  window_size=window_size, causal=True)
    assert jnp.allclose(out2, ref2, atol=5e-3, rtol=5e-3), \
        "grid>1 mismatch vs reference"

    # bf16 MXU-operand path (storage & accumulation stay f32); looser tolerance.
    prepared_bf16 = prepare_params(params, num_heads=heads,
                                   window_size=window_size, causal=True,
                                   compute_dtype=jnp.bfloat16)
    out_bf16 = jax.block_until_ready(temporal_attention(x, prepared_bf16))
    assert jnp.allclose(out_bf16, ref, atol=5e-2, rtol=5e-2), \
        "bf16 mismatch vs reference"

    # Non-causal path (exercises negative relative shifts / full masks).
    prepared_nc = prepare_params(params, num_heads=heads,
                                 window_size=window_size, causal=False)
    out_nc = jax.block_until_ready(temporal_attention(x, prepared_nc))
    ref_nc = temporal_attention_ref(x, params, num_heads=heads,
                                    window_size=window_size, causal=False)
    assert jnp.allclose(out_nc, ref_nc, atol=5e-3, rtol=5e-3), \
        "non-causal mismatch vs reference"

    print("KERNEL_OK")
</pallas_src>

<mosaic_0001>
module attributes {stable_mosaic.version = 11 : i64} {
  func.func @_temporal_attention_kernel(%arg0: i32, %arg1: memref<8x128xf32, #tpu.memory_space<vmem>>, %arg2: memref<128x384xf32, #tpu.memory_space<vmem>>, %arg3: memref<128x128xf32, #tpu.memory_space<vmem>>, %arg4: memref<1x128xf32, #tpu.memory_space<vmem>>, %arg5: memref<128x128xf32, #tpu.memory_space<vmem>>, %arg6: memref<4x128xf32, #tpu.memory_space<vmem>>, %arg7: memref<8x128xf32, #tpu.memory_space<vmem>>) attributes {dimension_semantics = [#tpu.dimension_semantics<parallel>], iteration_bounds = array<i64: 1>, scalar_prefetch = 0 : i64, scratch_operands = 0 : i64, tpu.core_type = #tpu.core_type<tc>, window_params = [{transform_indices = @transform_0, window_bounds = array<i64: 8, 128>}, {pipeline_mode = #tpu.pipeline_mode<synchronous>, transform_indices = @transform_1, window_bounds = array<i64: 128, 384>}, {pipeline_mode = #tpu.pipeline_mode<synchronous>, transform_indices = @transform_2, window_bounds = array<i64: 128, 128>}, {pipeline_mode = #tpu.pipeline_mode<synchronous>, transform_indices = @transform_3, window_bounds = array<i64: 1, 128>}, {pipeline_mode = #tpu.pipeline_mode<synchronous>, transform_indices = @transform_4, window_bounds = array<i64: 128, 128>}, {pipeline_mode = #tpu.pipeline_mode<synchronous>, transform_indices = @transform_5, window_bounds = array<i64: 4, 128>}, {transform_indices = @transform_6, window_bounds = array<i64: 8, 128>}]} {
    %c0 = arith.constant 0 : index
    %c0_0 = arith.constant 0 : index
    %0 = vector.load %arg1[%c0, %c0_0] : memref<8x128xf32, #tpu.memory_space<vmem>>, vector<8x128xf32>
    %c0_1 = arith.constant 0 : index
    %c0_2 = arith.constant 0 : index
    %1 = vector.load %arg2[%c0_1, %c0_2] : memref<128x384xf32, #tpu.memory_space<vmem>>, vector<128x384xf32>
    %cst = arith.constant dense<0.000000e+00> : vector<8x384xf32>
    %2 = tpu.matmul %0, %1, %cst {dimension_numbers = #tpu.dot_dimension_numbers<[1], [0], [0], [1], [0, 0, 1, 1], [], []>} : vector<8x128xf32>, vector<128x384xf32>, vector<8x384xf32> -> vector<8x384xf32>
    %3 = vector.extract_strided_slice %2 {offsets = [0, 0], sizes = [8, 128], strides = [1, 1]} : vector<8x384xf32> to vector<8x128xf32>
    %4 = vector.extract_strided_slice %2 {offsets = [0, 128], sizes = [8, 128], strides = [1, 1]} : vector<8x384xf32> to vector<8x128xf32>
    %5 = vector.extract_strided_slice %2 {offsets = [0, 256], sizes = [8, 128], strides = [1, 1]} : vector<8x384xf32> to vector<8x128xf32>
    %c0_3 = arith.constant 0 : index
    %c0_4 = arith.constant 0 : index
    %6 = vector.load %arg5[%c0_3, %c0_4] : memref<128x128xf32, #tpu.memory_space<vmem>>, vector<128x128xf32>
    %7 = arith.mulf %3, %4 : vector<8x128xf32>
    %cst_5 = arith.constant dense<0.000000e+00> : vector<8x128xf32>
    %8 = tpu.matmul %7, %6, %cst_5 {dimension_numbers = #tpu.dot_dimension_numbers<[1], [0], [0], [1], [0, 0, 1, 1], [], []>} : vector<8x128xf32>, vector<128x128xf32>, vector<8x128xf32> -> vector<8x128xf32>
    %c32_i32 = arith.constant 32 : i32
    %9 = tpu.dynamic_rotate %4 by %c32_i32 dim 1 : vector<8x128xf32>, i32 -> vector<8x128xf32>
    %10 = arith.mulf %3, %9 : vector<8x128xf32>
    %cst_6 = arith.constant dense<0.000000e+00> : vector<8x128xf32>
    %11 = tpu.matmul %10, %6, %cst_6 {dimension_numbers = #tpu.dot_dimension_numbers<[1], [0], [0], [1], [0, 0, 1, 1], [], []>} : vector<8x128xf32>, vector<128x128xf32>, vector<8x128xf32> -> vector<8x128xf32>
    %c1 = arith.constant 1 : index
    %c0_7 = arith.constant 0 : index
    %12 = vector.load %arg6[%c1, %c0_7] : memref<4x128xf32, #tpu.memory_space<vmem>>, vector<1x128xf32>
    %13 = vector.broadcast %12 : vector<1x128xf32> to vector<8x128xf32>
    %14 = arith.addf %11, %13 : vector<8x128xf32>
    %c64_i32 = arith.constant 64 : i32
    %15 = tpu.dynamic_rotate %4 by %c64_i32 dim 1 : vector<8x128xf32>, i32 -> vector<8x128xf32>
    %16 = arith.mulf %3, %15 : vector<8x128xf32>
    %cst_8 = arith.constant dense<0.000000e+00> : vector<8x128xf32>
    %17 = tpu.matmul %16, %6, %cst_8 {dimension_numbers = #tpu.dot_dimension_numbers<[1], [0], [0], [1], [0, 0, 1, 1], [], []>} : vector<8x128xf32>, vector<128x128xf32>, vector<8x128xf32> -> vector<8x128xf32>
    %c2 = arith.constant 2 : index
    %c0_9 = arith.constant 0 : index
    %18 = vector.load %arg6[%c2, %c0_9] : memref<4x128xf32, #tpu.memory_space<vmem>>, vector<1x128xf32>
    %19 = vector.broadcast %18 : vector<1x128xf32> to vector<8x128xf32>
    %20 = arith.addf %17, %19 : vector<8x128xf32>
    %c96_i32 = arith.constant 96 : i32
    %21 = tpu.dynamic_rotate %4 by %c96_i32 dim 1 : vector<8x128xf32>, i32 -> vector<8x128xf32>
    %22 = arith.mulf %3, %21 : vector<8x128xf32>
    %cst_10 = arith.constant dense<0.000000e+00> : vector<8x128xf32>
    %23 = tpu.matmul %22, %6, %cst_10 {dimension_numbers = #tpu.dot_dimension_numbers<[1], [0], [0], [1], [0, 0, 1, 1], [], []>} : vector<8x128xf32>, vector<128x128xf32>, vector<8x128xf32> -> vector<8x128xf32>
    %c3 = arith.constant 3 : index
    %c0_11 = arith.constant 0 : index
    %24 = vector.load %arg6[%c3, %c0_11] : memref<4x128xf32, #tpu.memory_space<vmem>>, vector<1x128xf32>
    %25 = vector.broadcast %24 : vector<1x128xf32> to vector<8x128xf32>
    %26 = arith.addf %23, %25 : vector<8x128xf32>
    %27 = arith.maximumf %8, %14 : vector<8x128xf32>
    %28 = arith.maximumf %27, %20 : vector<8x128xf32>
    %29 = arith.maximumf %28, %26 : vector<8x128xf32>
    %cst_12 = arith.constant 0.000000e+00 : f32
    %30 = vector.broadcast %cst_12 : f32 to vector<8x128xf32>
    %cst_13 = arith.constant 0.000000e+00 : f32
    %31 = vector.broadcast %cst_13 : f32 to vector<8x128xf32>
    %32 = arith.subf %8, %29 : vector<8x128xf32>
    %33 = math.exp %32 : vector<8x128xf32>
    %34 = arith.addf %30, %33 : vector<8x128xf32>
    %35 = arith.mulf %33, %5 : vector<8x128xf32>
    %36 = arith.addf %31, %35 : vector<8x128xf32>
    %37 = arith.subf %14, %29 : vector<8x128xf32>
    %38 = math.exp %37 : vector<8x128xf32>
    %39 = arith.addf %34, %38 : vector<8x128xf32>
    %c32_i32_14 = arith.constant 32 : i32
    %40 = tpu.dynamic_rotate %5 by %c32_i32_14 dim 1 : vector<8x128xf32>, i32 -> vector<8x128xf32>
    %41 = arith.mulf %38, %40 : vector<8x128xf32>
    %42 = arith.addf %36, %41 : vector<8x128xf32>
    %43 = arith.subf %20, %29 : vector<8x128xf32>
    %44 = math.exp %43 : vector<8x128xf32>
    %45 = arith.addf %39, %44 : vector<8x128xf32>
    %c64_i32_15 = arith.constant 64 : i32
    %46 = tpu.dynamic_rotate %5 by %c64_i32_15 dim 1 : vector<8x128xf32>, i32 -> vector<8x128xf32>
    %47 = arith.mulf %44, %46 : vector<8x128xf32>
    %48 = arith.addf %42, %47 : vector<8x128xf32>
    %49 = arith.subf %26, %29 : vector<8x128xf32>
    %50 = math.exp %49 : vector<8x128xf32>
    %51 = arith.addf %45, %50 : vector<8x128xf32>
    %c96_i32_16 = arith.constant 96 : i32
    %52 = tpu.dynamic_rotate %5 by %c96_i32_16 dim 1 : vector<8x128xf32>, i32 -> vector<8x128xf32>
    %53 = arith.mulf %50, %52 : vector<8x128xf32>
    %54 = arith.addf %48, %53 : vector<8x128xf32>
    %55 = tpu.reciprocal %51 {approx = true} : vector<8x128xf32> -> vector<8x128xf32>
    %56 = arith.mulf %54, %55 : vector<8x128xf32>
    %c0_17 = arith.constant 0 : index
    %c0_18 = arith.constant 0 : index
    %57 = vector.load %arg3[%c0_17, %c0_18] : memref<128x128xf32, #tpu.memory_space<vmem>>, vector<128x128xf32>
    %cst_19 = arith.constant dense<0.000000e+00> : vector<8x128xf32>
    %58 = tpu.matmul %56, %57, %cst_19 {dimension_numbers = #tpu.dot_dimension_numbers<[1], [0], [0], [1], [0, 0, 1, 1], [], []>} : vector<8x128xf32>, vector<128x128xf32>, vector<8x128xf32> -> vector<8x128xf32>
    %c0_20 = arith.constant 0 : index
    %c0_21 = arith.constant 0 : index
    %59 = vector.load %arg4[%c0_20, %c0_21] : memref<1x128xf32, #tpu.memory_space<vmem>>, vector<1x128xf32>
    %60 = vector.broadcast %59 : vector<1x128xf32> to vector<8x128xf32>
    %61 = arith.addf %58, %60 : vector<8x128xf32>
    %c0_22 = arith.constant 0 : index
    %c0_23 = arith.constant 0 : index
    %62 = vector.load %arg7[%c0_22, %c0_23] : memref<8x128xf32, #tpu.memory_space<vmem>>, vector<8x128xf32>
    tpu.vector_store %arg7[%c0_22, %c0_23], %61 {strides = array<i32>} : memref<8x128xf32, #tpu.memory_space<vmem>>, vector<8x128xf32>,
    return
  }
  func.func @transform_0(%arg0: i32) -> (i32, i32) {
    %c0_i32 = arith.constant 0 : i32
    %c0_i32_0 = arith.constant 0 : i32
    return %arg0, %c0_i32 : i32, i32
  }
  func.func @transform_1(%arg0: i32) -> (i32, i32) {
    %c0_i32 = arith.constant 0 : i32
    %c0_i32_0 = arith.constant 0 : i32
    %c0_i32_1 = arith.constant 0 : i32
    return %c0_i32, %c0_i32_0 : i32, i32
  }
  func.func @transform_2(%arg0: i32) -> (i32, i32) {
    %c0_i32 = arith.constant 0 : i32
    %c0_i32_0 = arith.constant 0 : i32
    %c0_i32_1 = arith.constant 0 : i32
    return %c0_i32, %c0_i32_0 : i32, i32
  }
  func.func @transform_3(%arg0: i32) -> (i32, i32) {
    %c0_i32 = arith.constant 0 : i32
    %c0_i32_0 = arith.constant 0 : i32
    %c0_i32_1 = arith.constant 0 : i32
    return %c0_i32, %c0_i32_0 : i32, i32
  }
  func.func @transform_4(%arg0: i32) -> (i32, i32) {
    %c0_i32 = arith.constant 0 : i32
    %c0_i32_0 = arith.constant 0 : i32
    %c0_i32_1 = arith.constant 0 : i32
    return %c0_i32, %c0_i32_0 : i32, i32
  }
  func.func @transform_5(%arg0: i32) -> (i32, i32) {
    %c0_i32 = arith.constant 0 : i32
    %c0_i32_0 = arith.constant 0 : i32
    %c0_i32_1 = arith.constant 0 : i32
    return %c0_i32, %c0_i32_0 : i32, i32
  }
  func.func @transform_6(%arg0: i32) -> (i32, i32) {
    %c0_i32 = arith.constant 0 : i32
    %c0_i32_0 = arith.constant 0 : i32
    return %arg0, %c0_i32 : i32, i32
  }
}

</mosaic_0001>

<bundles_post_ra>
// kernel: tpu_custom_call.1
= control target key start
LH: loop header
LB: loop body
LE: loop exit
PB: predicated region body
PF: predicated region fallthrough
CT: control target
= control target key end

     0   :  { %11 = vsyncpa [#allocation3], 0  ;;  %s1616_s0 = inlined_call_operand.hbm [shape: f32[8,128], index: 0, kind: input, shape index: {}]   ;;  %s1617_s1 = inlined_call_operand.hbm [shape: f32[128,384], index: 1, kind: input, shape index: {}]   ;;  %s1618_s2 = inlined_call_operand.hbm [shape: f32[128,128], index: 2, kind: input, shape index: {}]   ;;  %s1619_s3 = inlined_call_operand.vmem [shape: f32[1,128], index: 3, kind: input, shape index: {}]   ;;  %s1620_s4 = inlined_call_operand.hbm [shape: f32[128,128], index: 4, kind: input, shape index: {}]   ;;  %s1621_s5 = inlined_call_operand.vmem [shape: f32[4,128], index: 5, kind: input, shape index: {}]   ;;  %s1622_s6 = inlined_call_operand.hbm [shape: f32[8,128], index: 6, kind: output, shape index: {}]  }
   0x1   :  { %12 = vsyncpa [#allocation6], 0 }
   0x2   :  { %13 = vsyncpa [#allocation9], 0 }
   0x3   :  { %14 = vsyncpa [#allocation4], 0  ;;  %s1369_s21 = smov [#allocation5]   ;;  %s1251_s25 = scalar_lea.hbm %s1617_s1, 6144 }
   0x4   :  { %s30_s22 = sshll.u32 %s1369_s21, 4  ;;  %p1252_p0 = scmp.ne.s32.totalorder %s1617_s1, %s1251_s25  ;;  %s31_s22 = int_to_ptr.vmem [resolvable:$true] %s30_s22 }
   0x5   :  { %p1255_p1 = scmp.lt.u32.totalorder %s1251_s25, %s1617_s1 }
   0x7   :  { %p1257_p2 = pnand %p1255_p1, %p1252_p0 }
   0x9   :  { %1260 = shalt.err (!%p1257_p2)
}
   0xa   :  { %s1261_s30 = scalar_lea.vmem %s31_s22, 6144  ;;  %p1266_p4 = scmp.lt.s32.totalorder %s31_s22, %s31_s22 }
   0xb   :  { %p1262_p3 = scmp.ne.s32.totalorder %s31_s22, %s1261_s30  ;;  %p1267_p5 = scmp.lt.s32.totalorder %s1261_s30, %s1261_s30 }
   0xd   :  { %p1268_p6 = por %p1267_p5, %p1266_p4 }
   0xf   :  { %p1269_p7 = pnand %p1268_p6, %p1262_p3 }
  0x11   :  { %1272 = shalt.err (!%p1269_p7)
}
  0x12   :  { %s1370_s7 = smov 384   ;;  %s1371_s8 = smov 24  }
  0x13   :  { %36 = dma.hbm_to_vmem [thread:$0]  %s1617_s1, 6144, %s31_s22, [#allocation6], %s1370_s7, %s1370_s7, %s1371_s8  }
  0x14   :  { %s1372_s11 = smov [#allocation2]   ;;  %s1373_s13 = smov [#allocation7]  }
  0x15   :  { %s21_s12 = sshll.u32 %s1372_s11, 4  ;;  %s42_s14 = sshll.u32 %s1373_s13, 4  ;;  %s22_s12 = int_to_ptr.vmem [resolvable:$true] %s21_s12  ;;  %s43_s14 = int_to_ptr.vmem [resolvable:$true] %s42_s14 }
  0x16   :  { %s1273_s17 = scalar_lea.hbm %s1616_s0, 128 }
  0x17   :  { %p1274_p8 = scmp.ne.s32.totalorder %s1616_s0, %s1273_s17  ;;  %p1277_p9 = scmp.lt.u32.totalorder %s1273_s17, %s1616_s0 }
  0x19   :  { %p1279_p10 = pnand %p1277_p9, %p1274_p8 }
  0x1b   :  { %1282 = shalt.err (!%p1279_p10)
}
  0x1c   :  { %s1283_s1 = scalar_lea.vmem %s22_s12, 128  ;;  %p1288_p12 = scmp.lt.s32.totalorder %s22_s12, %s22_s12 }
  0x1d   :  { %p1284_p11 = scmp.ne.s32.totalorder %s22_s12, %s1283_s1  ;;  %p1289_p13 = scmp.lt.s32.totalorder %s1283_s1, %s1283_s1 }
  0x1f   :  { %p1290_p0 = por %p1289_p13, %p1288_p12 }
  0x21   :  { %p1291_p1 = pnand %p1290_p0, %p1284_p11 }
  0x23   :  { %1294 = shalt.err (!%p1291_p1)
}
  0x24   :  { %24 = dma.hbm_to_vmem [thread:$0]  %s1616_s0, 128, %s22_s12, [#allocation3]  }
  0x25   :  { %s1295_s26 = scalar_lea.hbm %s1618_s2, 2048 }
  0x26   :  { %p1296_p2 = scmp.ne.s32.totalorder %s1618_s2, %s1295_s26  ;;  %p1299_p3 = scmp.lt.u32.totalorder %s1295_s26, %s1618_s2 }
  0x28   :  { %p1301_p4 = pnand %p1299_p3, %p1296_p2 }
  0x2a   :  { %1304 = shalt.err (!%p1301_p4)
}
  0x2b   :  { %s1305_s7 = scalar_lea.vmem %s43_s14, 2048  ;;  %p1310_p6 = scmp.lt.s32.totalorder %s43_s14, %s43_s14 }
  0x2c   :  { %p1306_p5 = scmp.ne.s32.totalorder %s43_s14, %s1305_s7  ;;  %p1311_p7 = scmp.lt.s32.totalorder %s1305_s7, %s1305_s7 }
  0x2e   :  { %p1312_p8 = por %p1311_p7, %p1310_p6 }
  0x30   :  { %p1313_p9 = pnand %p1312_p8, %p1306_p5 }
  0x32   :  { %1316 = shalt.err (!%p1313_p9)
}
  0x33   :  { %s1374_s0 = smov 128   ;;  %s1375_s8 = smov 8  }
  0x34   :  { %48 = dma.hbm_to_vmem [thread:$0]  %s1618_s2, 2048, %s43_s14, [#allocation6], %s1374_s0, %s1374_s0, %s1375_s8  }
  0x35   :  { %s1376_s11 = smov [#allocation8]   ;;  %s1317_s16 = scalar_lea.hbm %s1620_s4, 2048 }
  0x36   :  { %s56_s12 = sshll.u32 %s1376_s11, 4  ;;  %p1318_p10 = scmp.ne.s32.totalorder %s1620_s4, %s1317_s16  ;;  %s57_s12 = int_to_ptr.vmem [resolvable:$true] %s56_s12 }
  0x37   :  { %p1321_p11 = scmp.lt.u32.totalorder %s1317_s16, %s1620_s4 }
  0x39   :  { %p1323_p12 = pnand %p1321_p11, %p1318_p10 }
  0x3b   :  { %1326 = shalt.err (!%p1323_p12)
}
  0x3c   :  { %s1327_s21 = scalar_lea.vmem %s57_s12, 2048  ;;  %p1332_p0 = scmp.lt.s32.totalorder %s57_s12, %s57_s12 }
  0x3d   :  { %p1328_p13 = scmp.ne.s32.totalorder %s57_s12, %s1327_s21  ;;  %p1333_p1 = scmp.lt.s32.totalorder %s1327_s21, %s1327_s21 }
  0x3f   :  { %p1334_p2 = por %p1333_p1, %p1332_p0 }
  0x41   :  { %p1335_p3 = pnand %p1334_p2, %p1328_p13 }
  0x43   :  { %1338 = shalt.err (!%p1335_p3)
}
  0x44   :  { %62 = dma.hbm_to_vmem [thread:$0]  %s1620_s4, 2048, %s57_s12, [#allocation9], %s1374_s0, %s1374_s0, %s1375_s8  }
  0x45   :  { %1361 = dma.done.wait [#allocation3], 128  }
  0x46   :  { %1362 = vsyncadd [#allocation3], 4294967168 }
  0x47   :  { %1363 = dma.done.wait [#allocation6], 8192  }
  0x48   :  { %1364 = vsyncadd [#allocation6], 4294959104 }
  0x49   :  { %1365 = dma.done.wait [#allocation9], 2048  }
  0x4a   :  { %1366 = vsyncadd [#allocation9], 4294965248  ;;  %v1377_v0 = vmov 0.0   ;;  %v1378_v1 = vmov 0.0|0.0   ;;  %v79_v2 = vld [vmem:[#allocation5 + $0x8] sm:$0xff]  ;;  %v82_v3 = vld [vmem:[#allocation5 + $0x20] sm:$0xff] }
  0x4b   :  { %190 = vmatprep.mubr.f32.mxu0 %v1377_v0  ;;  %1082 = vmatprep.subr.bf16.mxu1 %v1378_v1  ;;  %v78_v4 = vld [vmem:[#allocation5] sm:$0xff]  ;;  %v1050_v5 = vpack.c.bf16 %v82_v3, %v79_v2  ;;  %v81_v6 = vld [vmem:[#allocation5 + $0x18] sm:$0xff]  ;;  %v88_v8 = vld [vmem:[#allocation5 + $0x50] sm:$0xff]  ;;  %vm1379_vm0 = vmmov 0   ;;  %s1380_s4 = smov 96   ;;  %s1381_s1 = smov 32  }
  0x4c   :  { %v85_v7 = vld [vmem:[#allocation5 + $0x38] sm:$0xff]  ;;  %v1052_v9 = vpack.c.bf16 %v81_v6, %v78_v4  ;;  %v84_v11 = vld [vmem:[#allocation5 + $0x30] sm:$0xff]  ;;  %v87_v12 = vld [vmem:[#allocation5 + $0x48] sm:$0xff]  ;;  %872 = vmatprep.mubr.msk.f32.mxu1 %vm1379_vm0, %v1377_v0  ;;  %s1382_s22 = smov 64   ;;  %s1383_s30 = smov [#allocation10]  }
  0x4d   :  { %v1054_v10 = vpack.c.bf16 %v88_v8, %v85_v7  ;;  %v91_v13 = vld [vmem:[#allocation5 + $0x68] sm:$0xff]  ;;  %1051 = vmatprep.subr.bf16.mxu0 %v1050_v5  ;;  %v94_v14 = vld [vmem:[#allocation5 + $0x80] sm:$0xff]  ;;  %v1056_v15 = vpack.c.bf16 %v87_v12, %v84_v11  ;;  %v93_v18 = vld [vmem:[#allocation5 + $0x78] sm:$0xff]  ;;  %s723_s7 = sshll.u32 %s1383_s30, 4  ;;  %s724_s7 = int_to_ptr.vmem [resolvable:$true] %s723_s7 }
  0x4e   :  { %1053 = vmatpush1.bf16.msra.mxu0 %v1052_v9  ;;  %v1058_v16 = vpack.c.bf16 %v94_v14, %v91_v13  ;;  %v90_v17 = vld [vmem:[#allocation5 + $0x60] sm:$0xff]  ;;  %v97_v19 = vld [vmem:[#allocation5 + $0x98] sm:$0xff]  ;;  %v100_v20 = vld [vmem:[#allocation5 + $0xb0] sm:$0xff]  ;;  %s1339_s0 = scalar_lea.vmem %s724_s7, 128  ;;  %p1344_p5 = scmp.lt.s32.totalorder %s724_s7, %s724_s7 }
  0x4f   :  { %1055 = vmatprep.subr.bf16.mxu0 %v1054_v10  ;;  %v1060_v21 = vpack.c.bf16 %v93_v18, %v90_v17  ;;  %v1062_v22 = vpack.c.bf16 %v100_v20, %v97_v19  ;;  %v96_v23 = vld [vmem:[#allocation5 + $0x90] sm:$0xff]  ;;  %v99_v24 = vld [vmem:[#allocation5 + $0xa8] sm:$0xff]  ;;  %v106_v26 = vld [vmem:[#allocation5 + $0xe0] sm:$0xff]  ;;  %p1340_p4 = scmp.ne.s32.totalorder %s724_s7, %s1339_s0  ;;  %p1345_p6 = scmp.lt.s32.totalorder %s1339_s0, %s1339_s0 }
  0x50   :  { %v103_v25 = vld [vmem:[#allocation5 + $0xc8] sm:$0xff]  ;;  %v1064_v27 = vpack.c.bf16 %v99_v24, %v96_v23  ;;  %v102_v29 = vld [vmem:[#allocation5 + $0xc0] sm:$0xff]  ;;  %v105_v30 = vld [vmem:[#allocation5 + $0xd8] sm:$0xff] }
  0x51   :  { %v1066_v28 = vpack.c.bf16 %v106_v26, %v103_v25  ;;  %v109_v31 = vld [vmem:[#allocation5 + $0xf8] sm:$0xff]  ;;  %v112_v32 = vld [vmem:[#allocation5 + $0x110] sm:$0xff]  ;;  %v1068_v33 = vpack.c.bf16 %v105_v30, %v102_v29  ;;  %v111_v36 = vld [vmem:[#allocation5 + $0x108] sm:$0xff]  ;;  %p1346_p7 = por %p1345_p6, %p1344_p5 }
  0x52   :  { %1057 = vmatpush1.bf16.msra.mxu0 %v1056_v15  ;;  %v1070_v34 = vpack.c.bf16 %v112_v32, %v109_v31  ;;  %v108_v35 = vld [vmem:[#allocation5 + $0xf0] sm:$0xff]  ;;  %v115_v37 = vld [vmem:[#allocation5 + $0x128] sm:$0xff]  ;;  %v118_v38 = vld [vmem:[#allocation5 + $0x140] sm:$0xff] }
  0x53   :  { %1059 = vmatprep.subr.bf16.mxu0 %v1058_v16  ;;  %v1072_v39 = vpack.c.bf16 %v111_v36, %v108_v35  ;;  %v1074_v40 = vpack.c.bf16 %v118_v38, %v115_v37  ;;  %v114_v41 = vld [vmem:[#allocation5 + $0x120] sm:$0xff]  ;;  %v117_v42 = vld [vmem:[#allocation5 + $0x138] sm:$0xff]  ;;  %v124_v44 = vld [vmem:[#allocation5 + $0x170] sm:$0xff]  ;;  %p1347_p8 = pnand %p1346_p7, %p1340_p4 }
  0x54   :  { %v121_v43 = vld [vmem:[#allocation5 + $0x158] sm:$0xff]  ;;  %v1076_v45 = vpack.c.bf16 %v117_v42, %v114_v41  ;;  %v120_v47 = vld [vmem:[#allocation5 + $0x150] sm:$0xff]  ;;  %v123_v48 = vld [vmem:[#allocation5 + $0x168] sm:$0xff] }
  0x55   :  { %v1078_v46 = vpack.c.bf16 %v124_v44, %v121_v43  ;;  %v1080_v49 = vpack.c.bf16 %v123_v48, %v120_v47  ;;  %v267_v50 = vld [vmem:[#allocation8] sm:$0xff]  ;;  %v268_v51 = vld [vmem:[#allocation8 + $0x8] sm:$0xff]  ;;  %v1469_v52 = vld [vmem:[#allocation2] sm:$0xff] }
  0x56   :  { %1061 = vmatpush1.bf16.msra.mxu0 %v1060_v21  ;;  %v1471_v53 = vpack.c.bf16 %v268_v51, %v267_v50  ;;  %v269_v54 = vld [vmem:[#allocation8 + $0x10] sm:$0xff]  ;;  %v270_v55 = vld [vmem:[#allocation8 + $0x18] sm:$0xff]  ;;  %v271_v57 = vld [vmem:[#allocation8 + $0x20] sm:$0xff] }
  0x57   :  { %1063 = vmatprep.subr.bf16.mxu0 %v1062_v22  ;;  %v1476_v56 = vpack.c.bf16 %v270_v55, %v269_v54  ;;  %v272_v58 = vld [vmem:[#allocation8 + $0x28] sm:$0xff]  ;;  %v273_v60 = vld [vmem:[#allocation8 + $0x30] sm:$0xff]  ;;  %v274_v61 = vld [vmem:[#allocation8 + $0x38] sm:$0xff] }
  0x58   :  { %v1480_v59 = vpack.c.bf16 %v272_v58, %v271_v57  ;;  %v1484_v62 = vpack.c.bf16 %v274_v61, %v273_v60  ;;  %v275_v63 = vld [vmem:[#allocation8 + $0x40] sm:$0xff]  ;;  %v276_v2 = vld [vmem:[#allocation8 + $0x48] sm:$0xff]  ;;  %v277_v4 = vld [vmem:[#allocation8 + $0x50] sm:$0xff] }
  0x59   :  { %v1488_v3 = vpack.c.bf16 %v276_v2, %v275_v63  ;;  %v278_v5 = vld [vmem:[#allocation8 + $0x58] sm:$0xff]  ;;  %v279_v7 = vld [vmem:[#allocation8 + $0x60] sm:$0xff]  ;;  %v280_v8 = vld [vmem:[#allocation8 + $0x68] sm:$0xff] }
  0x5a   :  { %1065 = vmatpush1.bf16.msra.mxu0 %v1064_v27  ;;  %v1492_v6 = vpack.c.bf16 %v278_v5, %v277_v4  ;;  %v1496_v9 = vpack.c.bf16 %v280_v8, %v279_v7  ;;  %v281_v10 = vld [vmem:[#allocation8 + $0x70] sm:$0xff]  ;;  %v282_v11 = vld [vmem:[#allocation8 + $0x78] sm:$0xff]  ;;  %v83_v14 = vld [vmem:[#allocation5 + $0x28] sm:$0xff] }
  0x5b   :  { %1067 = vmatprep.subr.bf16.mxu0 %v1066_v28  ;;  %v1501_v12 = vpack.c.bf16 %v282_v11, %v281_v10  ;;  %v80_v13 = vld [vmem:[#allocation5 + $0x10] sm:$0xff]  ;;  %v86_v15 = vld [vmem:[#allocation5 + $0x40] sm:$0xff]  ;;  %v89_v17 = vld [vmem:[#allocation5 + $0x58] sm:$0xff] }
  0x5c   :  { %v1083_v16 = vpack.c.bf16 %v83_v14, %v80_v13  ;;  %v1086_v18 = vpack.c.bf16 %v89_v17, %v86_v15  ;;  %v92_v19 = vld [vmem:[#allocation5 + $0x70] sm:$0xff]  ;;  %v95_v20 = vld [vmem:[#allocation5 + $0x88] sm:$0xff]  ;;  %v98_v22 = vld [vmem:[#allocation5 + $0xa0] sm:$0xff] }
  0x5d   :  { %v1089_v21 = vpack.c.bf16 %v95_v20, %v92_v19  ;;  %v101_v23 = vld [vmem:[#allocation5 + $0xb8] sm:$0xff]  ;;  %v104_v25 = vld [vmem:[#allocation5 + $0xd0] sm:$0xff]  ;;  %v107_v26 = vld [vmem:[#allocation5 + $0xe8] sm:$0xff] }
  0x5e   :  { %1069 = vmatpush1.bf16.msra.mxu0 %v1068_v33  ;;  %1084 = vmatpush3.bf16.msra.mxu1 %v1083_v16  ;;  %v1092_v24 = vpack.c.bf16 %v101_v23, %v98_v22  ;;  %v1095_v27 = vpack.c.bf16 %v107_v26, %v104_v25  ;;  %v110_v28 = vld [vmem:[#allocation5 + $0x100] sm:$0xff]  ;;  %v113_v29 = vld [vmem:[#allocation5 + $0x118] sm:$0xff]  ;;  %v116_v31 = vld [vmem:[#allocation5 + $0x130] sm:$0xff] }
  0x5f   :  { %1071 = vmatprep.subr.bf16.mxu0 %v1070_v34  ;;  %1085 = vmatprep.subr.bf16.mxu1 %v1378_v1  ;;  %v1098_v30 = vpack.c.bf16 %v113_v29, %v110_v28  ;;  %v119_v32 = vld [vmem:[#allocation5 + $0x148] sm:$0xff]  ;;  %v122_v34 = vld [vmem:[#allocation5 + $0x160] sm:$0xff]  ;;  %v125_v35 = vld [vmem:[#allocation5 + $0x178] sm:$0xff] }
  0x60   :  { %v1101_v33 = vpack.c.bf16 %v119_v32, %v116_v31  ;;  %v1104_v36 = vpack.c.bf16 %v125_v35, %v122_v34  ;;  %v624_v50 = vld [vmem:[#allocation7 + $0x8] sm:$0xff]  ;;  %v627_v55 = vld [vmem:[#allocation7 + $0x20] sm:$0xff]  ;;  %v629_v58 = vld [vmem:[#allocation7 + $0x30] sm:$0xff] }
  0x61   :  { %v631_v61 = vld [vmem:[#allocation7 + $0x40] sm:$0xff]  ;;  %v633_v2 = vld [vmem:[#allocation7 + $0x50] sm:$0xff]  ;;  %v734_v11 = vld [vmem:[%s1621_s5 + $0x1] ss:$0 sm:$0xff] }
  0x62   :  { %1073 = vmatpush1.bf16.msra.mxu0 %v1072_v39  ;;  %1087 = vmatpush3.bf16.msra.mxu1 %v1086_v18  ;;  %v635_v5 = vld [vmem:[#allocation7 + $0x60] sm:$0xff]  ;;  %v637_v8 = vld [vmem:[#allocation7 + $0x70] sm:$0xff]  ;;  %v735_v15 = vld [vmem:[%s1621_s5 + $0x2] ss:$0 sm:$0xff] }
  0x63   :  { %1075 = vmatprep.subr.bf16.mxu0 %v1074_v40  ;;  %1088 = vmatprep.subr.bf16.mxu1 %v1378_v1  ;;  %v736_v20 = vld [vmem:[%s1621_s5 + $0x3] ss:$0 sm:$0xff] }
  0x66   :  { %1077 = vmatpush1.bf16.msra.mxu0 %v1076_v45  ;;  %1090 = vmatpush3.bf16.msra.mxu1 %v1089_v21 }
  0x67   :  { %1079 = vmatprep.subr.bf16.mxu0 %v1078_v46  ;;  %1091 = vmatprep.subr.bf16.mxu1 %v1378_v1 }
  0x6a   :  { %1081 = vmatpush1.bf16.msra.mxu0 %v1080_v49  ;;  %1093 = vmatpush3.bf16.msra.mxu1 %v1092_v24  ;;  %v623_v49 = vld [vmem:[#allocation7] sm:$0xff] }
  0x6b   :  { %1106 = vmatprep.subr.bf16.mxu0 %v1378_v1  ;;  %1094 = vmatprep.subr.bf16.mxu1 %v1378_v1  ;;  %v1203_v51 = vpack.c.bf16 %v624_v50, %v623_v49 }
  0x6d   :  { %191 = vmatmul.mubr.f32.vlgmr.msra.gmra.mrb[0].mxu0 %v1469_v52 }
  0x6e   :  { %1108 = vmatpush3.bf16.msra.mxu0 %v1471_v53  ;;  %907 = vmatprep.mubr.msk.f32.mxu0 %vm1379_vm0, %v1377_v0 }
  0x6f   :  { %1109 = vmatprep.subr.bf16.mxu0 %v1378_v1  ;;  %1096 = vmatpush3.bf16.msra.mxu1 %v1095_v27 }
  0x70   :  { %1097 = vmatprep.subr.bf16.mxu1 %v1378_v1 }
  0x72   :  { %1111 = vmatpush3.bf16.msra.mxu0 %v1476_v56 }
  0x73   :  { %1112 = vmatprep.subr.bf16.mxu0 %v1378_v1  ;;  %1099 = vmatpush3.bf16.msra.mxu1 %v1098_v30 }
  0x74   :  { %1100 = vmatprep.subr.bf16.mxu1 %v1378_v1 }
  0x76   :  { %1114 = vmatpush3.bf16.msra.mxu0 %v1480_v59 }
  0x77   :  { %1115 = vmatprep.subr.bf16.mxu0 %v1378_v1  ;;  %1102 = vmatpush3.bf16.msra.mxu1 %v1101_v33 }
  0x78   :  { %1103 = vmatprep.subr.bf16.mxu1 %v1378_v1 }
  0x7a   :  { %1117 = vmatpush3.bf16.msra.mxu0 %v1484_v62 }
  0x7b   :  { %1118 = vmatprep.subr.bf16.mxu0 %v1378_v1  ;;  %1105 = vmatpush3.bf16.msra.mxu1 %v1104_v36 }
  0x7c   :  { %1130 = vmatprep.subr.bf16.mxu1 %v1378_v1 }
  0x7e   :  { %1120 = vmatpush3.bf16.msra.mxu0 %v1488_v3  ;;  %873 = vmatmul.mubr.f32.vlgmr.msra.gmra.mrb[0].mxu1 %v1469_v52  ;;  %v625_v52 = vld [vmem:[#allocation7 + $0x10] sm:$0xff] }
  0x7f   :  { %1121 = vmatprep.subr.bf16.mxu0 %v1378_v1  ;;  %1132 = vmatpush3.bf16.msra.mxu1 %v1471_v53 }
  0x80   :  { %942 = vmatprep.mubr.msk.f32.mxu1 %vm1379_vm0, %v1377_v0  ;;  %1133 = vmatprep.subr.bf16.mxu1 %v1378_v1 }
  0x82   :  { %1123 = vmatpush3.bf16.msra.mxu0 %v1492_v6 }
  0x83   :  { %1124 = vmatprep.subr.bf16.mxu0 %v1378_v1  ;;  %1135 = vmatpush3.bf16.msra.mxu1 %v1476_v56 }
  0x84   :  { %1136 = vmatprep.subr.bf16.mxu1 %v1378_v1 }
  0x86   :  { %1126 = vmatpush3.bf16.msra.mxu0 %v1496_v9 }
  0x87   :  { %1127 = vmatprep.subr.bf16.mxu0 %v1378_v1  ;;  %1138 = vmatpush3.bf16.msra.mxu1 %v1480_v59 }
  0x88   :  { %1139 = vmatprep.subr.bf16.mxu1 %v1378_v1 }
  0x8a   :  { %1129 = vmatpush3.bf16.msra.mxu0 %v1501_v12 }
  0x8b   :  { %1154 = vmatprep.subr.bf16.mxu0 %v1378_v1  ;;  %1141 = vmatpush3.bf16.msra.mxu1 %v1484_v62 }
  0x8c   :  { %1142 = vmatprep.subr.bf16.mxu1 %v1378_v1 }
  0x8f   :  { %1144 = vmatpush3.bf16.msra.mxu1 %v1488_v3 }
  0x90   :  { %1145 = vmatprep.subr.bf16.mxu1 %v1378_v1 }
  0x93   :  { %1147 = vmatpush3.bf16.msra.mxu1 %v1492_v6 }
  0x94   :  { %1148 = vmatprep.subr.bf16.mxu1 %v1378_v1 }
  0x97   :  { %1150 = vmatpush3.bf16.msra.mxu1 %v1496_v9 }
  0x98   :  { %1151 = vmatprep.subr.bf16.mxu1 %v1378_v1 }
  0x9b   :  { %1153 = vmatpush3.bf16.msra.mxu1 %v1501_v12 }
  0x9c   :  { %1178 = vmatprep.subr.bf16.mxu1 %v1378_v1 }
 0x140   :  { %v192_v37 = vpop.f32.mrb[0].mxu0 }
 0x141   :  { %v194_v38 = vpop.f32.mrb[1].mxu0 }
 0x142   :  { %v283_v39 = vmul.f32 %v194_v38, %v192_v37  ;;  %510 = vrot.lane.b32.xlu1 %v194_v38, %s1380_s4  ;;  %354 = vrot.lane.b32.xlu0 %v194_v38, %s1381_s1 }
 0x144   :  { %908 = vmatmul.mubr.f32.vlgmr.msra.gmra.mrb[2].mxu0 %v283_v39 }
 0x145   :  { %1156 = vmatpush3.bf16.msra.mxu0 %v1471_v53  ;;  %977 = vmatprep.mubr.msk.f32.mxu0 %vm1379_vm0, %v1377_v0 }
 0x146   :  { %432 = vrot.lane.b32.xlu0 %v194_v38, %s1382_s22  ;;  %1157 = vmatprep.subr.bf16.mxu0 %v1378_v1 }
 0x149   :  { %1159 = vmatpush3.bf16.msra.mxu0 %v1476_v56 }
 0x14a   :  { %1160 = vmatprep.subr.bf16.mxu0 %v1378_v1 }
 0x14d   :  { %1162 = vmatpush3.bf16.msra.mxu0 %v1480_v59 }
 0x14e   :  { %1163 = vmatprep.subr.bf16.mxu0 %v1378_v1 }
 0x151   :  { %1165 = vmatpush3.bf16.msra.mxu0 %v1484_v62  ;;  %v1561_v44 = vpop.f32.mrb[0].mxu1 }
 0x152   :  { %1166 = vmatprep.subr.bf16.mxu0 %v1378_v1  ;;  %601 = vrot.lane.b32.xlu1 %v1561_v44, %s1381_s1  ;;  %v874_v45 = vpop.f32.mrb[1].mxu1 }
 0x153   :  { %609 = vrot.lane.b32.xlu0 %v1561_v44, %s1382_s22 }
 0x155   :  { %1168 = vmatpush3.bf16.msra.mxu0 %v1488_v3 }
 0x156   :  { %1169 = vmatprep.subr.bf16.mxu0 %v1378_v1  ;;  %617 = vrot.lane.b32.xlu1 %v1561_v44, %s1380_s4 }
 0x159   :  { %1171 = vmatpush3.bf16.msra.mxu0 %v1492_v6 }
 0x15a   :  { %1172 = vmatprep.subr.bf16.mxu0 %v1378_v1 }
 0x15d   :  { %1174 = vmatpush3.bf16.msra.mxu0 %v1496_v9 }
 0x15e   :  { %1175 = vmatprep.subr.bf16.mxu0 %v1378_v1 }
 0x161   :  { %1177 = vmatpush3.bf16.msra.mxu0 %v1501_v12 }
 0x162   :  { %1202 = vmatprep.subr.bf16.mxu0 %v1378_v1 }
 0x1b4   :  { %v355_v40 = vpop.permute.xlu0 %354 }
 0x1b5   :  { %v356_v41 = vmul.f32 %v355_v40, %v192_v37 }
 0x1b7   :  { %943 = vmatmul.mubr.f32.vlgmr.msra.gmra.mrb[2].mxu1 %v356_v41 }
 0x1b8   :  { %1180 = vmatpush3.bf16.msra.mxu1 %v1471_v53  ;;  %v433_v42 = vpop.permute.xlu0 %432  ;;  %1012 = vmatprep.mubr.msk.f32.mxu1 %vm1379_vm0, %v1377_v0  ;;  %v626_v53 = vld [vmem:[#allocation7 + $0x18] sm:$0xff] }
 0x1b9   :  { %v434_v43 = vmul.f32 %v433_v42, %v192_v37  ;;  %1181 = vmatprep.subr.bf16.mxu1 %v1378_v1  ;;  %v1206_v54 = vpack.c.bf16 %v626_v53, %v625_v52 }
 0x1bb   :  { %978 = vmatmul.mubr.f32.vlgmr.msra.gmra.mrb[4].mxu0 %v434_v43 }
 0x1bc   :  { %1183 = vmatpush3.bf16.msra.mxu1 %v1476_v56  ;;  %1047 = vmatprep.mubr.msk.f32.mxu0 %vm1379_vm0, %v1377_v0  ;;  %v511_v0 = vpop.permute.xlu1 %510  ;;  %v628_v56 = vld [vmem:[#allocation7 + $0x28] sm:$0xff] }
 0x1bd   :  { %1184 = vmatprep.subr.bf16.mxu1 %v1378_v1  ;;  %v512_v46 = vmul.f32 %v511_v0, %v192_v37  ;;  %1204 = vmatpush3.bf16.msra.mxu0 %v1203_v51  ;;  %v1209_v57 = vpack.c.bf16 %v628_v56, %v627_v55 }
 0x1be   :  { %1205 = vmatprep.subr.bf16.mxu0 %v1378_v1 }
 0x1c0   :  { %1186 = vmatpush3.bf16.msra.mxu1 %v1480_v59  ;;  %v630_v59 = vld [vmem:[#allocation7 + $0x38] sm:$0xff] }
 0x1c1   :  { %1187 = vmatprep.subr.bf16.mxu1 %v1378_v1  ;;  %1207 = vmatpush3.bf16.msra.mxu0 %v1206_v54  ;;  %v1212_v60 = vpack.c.bf16 %v630_v59, %v629_v58 }
 0x1c2   :  { %1208 = vmatprep.subr.bf16.mxu0 %v1378_v1 }
 0x1c4   :  { %1189 = vmatpush3.bf16.msra.mxu1 %v1484_v62  ;;  %v632_v62 = vld [vmem:[#allocation7 + $0x48] sm:$0xff]  ;;  %v602_v33 = vpop.permute.xlu1 %601 }
 0x1c5   :  { %1190 = vmatprep.subr.bf16.mxu1 %v1378_v1  ;;  %1210 = vmatpush3.bf16.msra.mxu0 %v1209_v57  ;;  %v1215_v63 = vpack.c.bf16 %v632_v62, %v631_v61  ;;  %v610_v37 = vpop.permute.xlu0 %609 }
 0x1c6   :  { %1211 = vmatprep.subr.bf16.mxu0 %v1378_v1 }
 0x1c8   :  { %1192 = vmatpush3.bf16.msra.mxu1 %v1488_v3  ;;  %v634_v3 = vld [vmem:[#allocation7 + $0x58] sm:$0xff]  ;;  %v618_v42 = vpop.permute.xlu1 %617 }
 0x1c9   :  { %1193 = vmatprep.subr.bf16.mxu1 %v1378_v1  ;;  %1213 = vmatpush3.bf16.msra.mxu0 %v1212_v60  ;;  %v1218_v4 = vpack.c.bf16 %v634_v3, %v633_v2 }
 0x1ca   :  { %1214 = vmatprep.subr.bf16.mxu0 %v1378_v1 }
 0x1cc   :  { %1195 = vmatpush3.bf16.msra.mxu1 %v1492_v6  ;;  %v636_v6 = vld [vmem:[#allocation7 + $0x68] sm:$0xff] }
 0x1cd   :  { %1196 = vmatprep.subr.bf16.mxu1 %v1378_v1  ;;  %1216 = vmatpush3.bf16.msra.mxu0 %v1215_v63  ;;  %v1221_v7 = vpack.c.bf16 %v636_v6, %v635_v5 }
 0x1ce   :  { %1217 = vmatprep.subr.bf16.mxu0 %v1378_v1 }
 0x1d0   :  { %1198 = vmatpush3.bf16.msra.mxu1 %v1496_v9  ;;  %v638_v9 = vld [vmem:[#allocation7 + $0x78] sm:$0xff] }
 0x1d1   :  { %1199 = vmatprep.subr.bf16.mxu1 %v1378_v1  ;;  %1219 = vmatpush3.bf16.msra.mxu0 %v1218_v4  ;;  %v1224_v10 = vpack.c.bf16 %v638_v9, %v637_v8 }
 0x1d2   :  { %1220 = vmatprep.subr.bf16.mxu0 %v1378_v1 }
 0x1d4   :  { %1201 = vmatpush3.bf16.msra.mxu1 %v1501_v12 }
 0x1d5   :  { %1222 = vmatpush3.bf16.msra.mxu0 %v1221_v7 }
 0x1d6   :  { %1223 = vmatprep.subr.bf16.mxu0 %v1378_v1 }
 0x1d7   :  { %1013 = vmatmul.mubr.f32.vlgmr.msra.gmra.mrb[4].mxu1 %v512_v46 }
 0x1d9   :  { %1225 = vmatpush3.bf16.msra.mxu0 %v1224_v10 }
 0x217   :  { %v350_v47 = vpop.f32.mrb[2].mxu0 }
 0x218   :  { %v909_v48 = vpop.f32.mrb[3].mxu0 }
 0x28a   :  { %v428_v12 = vpop.f32.mrb[2].mxu1 }
 0x28b   :  { %v429_v13 = vadd.f32 %v734_v11, %v428_v12  ;;  %v944_v14 = vpop.f32.mrb[3].mxu1 }
 0x28d   :  { %v588_v16 = vmax.f32 %v350_v47, %v429_v13 }
 0x28e   :  { %v506_v17 = vpop.f32.mrb[4].mxu0 }
 0x28f   :  { %v507_v18 = vadd.f32 %v735_v15, %v506_v17  ;;  %v979_v19 = vpop.f32.mrb[5].mxu0 }
 0x291   :  { %v589_v1 = vmax.f32 %v588_v16, %v507_v18 }
 0x2aa   :  { %v584_v21 = vpop.f32.mrb[4].mxu1 }
 0x2ab   :  { %v585_v22 = vadd.f32 %v736_v20, %v584_v21  ;;  %v1014_v23 = vpop.f32.mrb[5].mxu1 }
 0x2ad   :  { %v590_v24 = vmax.f32 %v589_v1, %v585_v22 }
 0x2af   :  { %v591_v25 = vsub.f32 %v350_v47, %v590_v24  ;;  %v597_v26 = vsub.f32 %v429_v13, %v590_v24  ;;  %v605_v27 = vsub.f32 %v507_v18, %v590_v24  ;;  %v613_v28 = vsub.f32 %v585_v22, %v590_v24 }
 0x2b1   :  { %v592_v29 = vmul.f32 1.442695, %v591_v25  ;;  %v598_v30 = vmul.f32 1.442695, %v597_v26  ;;  %v606_v31 = vmul.f32 1.442695, %v605_v27 }
 0x2b2   :  { %v614_v32 = vmul.f32 1.442695, %v613_v28 }
 0x2b3   :  { %1241 = vpow2.f32 %v592_v29 }
 0x2b4   :  { %1243 = vpow2.f32 %v598_v30 }
 0x2b5   :  { %1245 = vpow2.f32 %v606_v31 }
 0x2b6   :  { %1247 = vpow2.f32 %v614_v32 }
 0x2bd   :  { %v1242_v34 = vpop.eup %1241 }
 0x2be   :  { %v595_v35 = vmul.f32 %v1242_v34, %v1561_v44  ;;  %v1244_v36 = vpop.eup %1243  ;;  %v737_v44 = vld [vmem:[%s1619_s3] ss:$0 sm:$0xff] }
 0x2bf   :  { %v1246_v38 = vpop.eup %1245  ;;  %v603_v39 = vmul.f32 %v1244_v36, %v602_v33  ;;  %v600_v40 = vadd.f32 %v1244_v36, %v1242_v34 }
 0x2c0   :  { %v1248_v41 = vpop.eup %1247  ;;  %v611_v0 = vmul.f32 %v1246_v38, %v610_v37 }
 0x2c1   :  { %v604_v43 = vadd.f32 %v603_v39, %v595_v35  ;;  %v608_v45 = vadd.f32 %v1246_v38, %v600_v40  ;;  %v619_v46 = vmul.f32 %v1248_v41, %v618_v42 }
 0x2c3   :  { %v612_v47 = vadd.f32 %v611_v0, %v604_v43  ;;  %v616_v48 = vadd.f32 %v1248_v41, %v608_v45 }
 0x2c5   :  { %v620_v49 = vadd.f32 %v619_v46, %v612_v47  ;;  %1249 = vrcp.f32 %v616_v48 }
 0x2cf   :  { %v1250_v50 = vpop.eup %1249 }
 0x2d0   :  { %v622_v51 = vmul.f32 %v1250_v50, %v620_v49 }
 0x2d2   :  { %1048 = vmatmul.mubr.f32.vlgmr.msra.gmra.mrb[6].mxu0 %v622_v51 }
 0x3a5   :  { %v712_v52 = vpop.f32.mrb[6].mxu0 }
 0x3a6   :  { %v713_v53 = vadd.f32 %v737_v44, %v712_v52  ;;  %v1049_v54 = vpop.f32.mrb[7].mxu0 }
 0x3a8   :  { %716 = vst [vmem:[#allocation10] sm:$0xff] %v713_v53 }
 0x3a9   :  { %1350 = shalt.err (!%p1347_p8)
}
 0x3aa   :  { %s1351_s10 = scalar_lea.hbm %s1622_s6, 128 }
 0x3ab   :  { %p1352_p9 = scmp.ne.s32.totalorder %s1622_s6, %s1351_s10  ;;  %p1355_p10 = scmp.lt.u32.totalorder %s1351_s10, %s1622_s6 }
 0x3ad   :  { %p1357_p11 = pnand %p1355_p10, %p1352_p9 }
 0x3af   :  { %1360 = shalt.err (!%p1357_p11)
}
 0x3b0   :  { %726 = dma.vmem_to_hbm [thread:$0]  %s724_s7, 128, %s1622_s6, [#allocation4]  }
 0x3b1   :  { %1367 = dma.done.wait [#allocation4], 128  }
 0x3b2   :  { %1368 = vsyncadd [#allocation4], 4294967168 }
 0x3b3   :  { %730 = vsyncpa [#allocation3], 1 }
 0x3b4   :  { %731 = vsyncpa [#allocation6], 1 }
 0x3b5   :  { %732 = vsyncpa [#allocation9], 1 }
 0x3b6   :  { %733 = vsyncpa [#allocation4], 1 }

</bundles_post_ra>
